<compile_context>
chip_gen: v7x
topology: tpu7x:2x2x1
jax: 0.10.0
libtpu: 0.0.40
codegen_flags: <defaults>
</compile_context>

<pallas_src>
import functools

import jax
import jax.numpy as jnp
from jax.experimental import pallas as pl
from jax.experimental.pallas import tpu as pltpu


# ---------------------------------------------------------------------------
# Primary path: aliased embedding + ctx-row scatter (minimal HBM traffic).
# ---------------------------------------------------------------------------
def _ctx_scatter_kernel(n_pre, n_ctx, emb_ref, ctx_ref, out_ref, sem):
    # out_ref is the SAME HBM buffer as emb_ref (input_output_aliases={0:0}).
    # Prefix / suffix rows are already in place; scatter only the learned ctx
    # rows into seq slots [n_pre, n_pre + n_ctx).
    del emb_ref  # aliased with out_ref; never read
    cp = pltpu.make_async_copy(
        ctx_ref, out_ref.at[:, pl.ds(n_pre, n_ctx), :], sem)
    cp.start()
    cp.wait()


def prompt_learner_forward(embedding, ctx, *, n_prefix=1):
    """PromptLearner.forward() for class_token_position='end'.

    embedding: (n_cls, total, D) full token embeddings of the tokenized
               prompts (the buffer the module slices prefix/suffix from).
    ctx:       (n_cls, n_ctx, D) learned context vectors (dim()==3 path).
    returns:   (n_cls, total, D) == cat([prefix, ctx, suffix], axis=1)
    """
    n_cls, total, d = embedding.shape
    cn, n_ctx, cd = ctx.shape
    assert cn == n_cls and cd == d and n_prefix + n_ctx <= total
    ctx = ctx.astype(embedding.dtype)

    kernel = functools.partial(_ctx_scatter_kernel, n_prefix, n_ctx)
    return pl.pallas_call(
        kernel,
        out_shape=jax.ShapeDtypeStruct((n_cls, total, d), embedding.dtype),
        in_specs=[
            pl.BlockSpec(memory_space=pl.ANY),   # embedding: stays in HBM (aliased)
            pl.BlockSpec(memory_space=pl.ANY),   # ctx: stays in HBM (DMA source)
        ],
        out_specs=pl.BlockSpec(memory_space=pl.ANY),
        scratch_shapes=[pltpu.SemaphoreType.DMA(())],
        input_output_aliases={0: 0},             # embedding buffer IS the output
    )(embedding, ctx)


# ---------------------------------------------------------------------------
# Fallback path: explicit prefix/ctx/suffix signature, DMA-level concat.
# ---------------------------------------------------------------------------
def _concat_scatter_kernel(n_pre, n_ctx, n_suf,
                           prefix_ref, ctx_ref, suffix_ref, out_ref, sems):
    copies = (
        pltpu.make_async_copy(
            prefix_ref, out_ref.at[:, pl.ds(0, n_pre), :], sems.at[0]),
        pltpu.make_async_copy(
            ctx_ref, out_ref.at[:, pl.ds(n_pre, n_ctx), :], sems.at[1]),
        pltpu.make_async_copy(
            suffix_ref, out_ref.at[:, pl.ds(n_pre + n_ctx, n_suf), :], sems.at[2]),
    )
    for c in copies:   # overlap the three independent DMAs
        c.start()
    for c in copies:
        c.wait()


def prompt_learner_concat(token_prefix, ctx, token_suffix):
    """cat([prefix, ctx, suffix], axis=1) via DMA scatter (no VMEM shuffles)."""
    n_cls, n_pre, d = token_prefix.shape
    _, n_ctx, _ = ctx.shape
    _, n_suf, _ = token_suffix.shape
    total = n_pre + n_ctx + n_suf
    dtype = token_prefix.dtype
    ctx = ctx.astype(dtype)
    token_suffix = token_suffix.astype(dtype)

    kernel = functools.partial(_concat_scatter_kernel, n_pre, n_ctx, n_suf)
    return pl.pallas_call(
        kernel,
        out_shape=jax.ShapeDtypeStruct((n_cls, total, d), dtype),
        in_specs=[pl.BlockSpec(memory_space=pl.ANY)] * 3,
        out_specs=pl.BlockSpec(memory_space=pl.ANY),
        scratch_shapes=[pltpu.SemaphoreType.DMA((3,))],
    )(token_prefix, ctx, token_suffix)


# TODO(synk): class_token_position in {'middle','front'} needs per-class
# name_lens-dependent ragged segment placement (dynamic-length DMA slices);
# only the default 'end' path is implemented.


def _reference_forward(token_prefix, ctx, token_suffix):
    return jnp.concatenate([token_prefix, ctx, token_suffix], axis=1)


if __name__ == "__main__":
    # Small synthetic shapes consistent with the module: n_cls classes, n_ctx
    # learned context tokens, total sequence length 16 (stand-in for CLIP's
    # 77), ctx_dim = 128.
    n_cls = 4
    n_ctx = 8
    total_seq = 16
    ctx_dim = 128
    dtype = jnp.float32

    key = jax.random.PRNGKey(0)
    k_ctx, k_emb = jax.random.split(key)

    # nn.init.normal_(ctx_vectors, std=0.02)
    ctx = 0.02 * jax.random.normal(k_ctx, (n_cls, n_ctx, ctx_dim), dtype=dtype)

    # Synthetic token embeddings standing in for
    # clip_model.token_embedding(tokenized_prompts).
    embedding = jax.random.normal(k_emb, (n_cls, total_seq, ctx_dim),
                                  dtype=dtype)
    token_prefix = embedding[:, :1, :]            # SOS token embedding
    token_suffix = embedding[:, 1 + n_ctx:, :]    # class name + EOS + padding

    ref = _reference_forward(token_prefix, ctx, token_suffix)

    # Primary path: aliased full-embedding scatter of the learned ctx rows.
    prompts = prompt_learner_forward(embedding, ctx)
    prompts = jax.block_until_ready(prompts)
    assert prompts.shape == (n_cls, total_seq, ctx_dim), prompts.shape
    assert prompts.dtype == dtype
    assert jnp.allclose(prompts, ref), "aliased path: mismatch vs reference"

    # Fallback path: module's prefix/ctx/suffix signature via DMA concat.
    prompts2 = prompt_learner_concat(token_prefix, ctx, token_suffix)
    prompts2 = jax.block_until_ready(prompts2)
    assert prompts2.shape == (n_cls, total_seq, ctx_dim), prompts2.shape
    assert jnp.allclose(prompts2, ref), "concat path: mismatch vs reference"

    print("KERNEL_OK")
</pallas_src>

<mosaic_0001>
module attributes {stable_mosaic.version = 11 : i64} {
  func.func @_ctx_scatter_kernel(%arg0: memref<4x16x128xf32, #tpu.memory_space<any>>, %arg1: memref<4x8x128xf32, #tpu.memory_space<any>>, %arg2: memref<4x16x128xf32, #tpu.memory_space<any>>, %arg3: memref<!tpu.dma_semaphore, #tpu.memory_space<semaphore_mem>>) attributes {dimension_semantics = [], scalar_prefetch = 0 : i64, scratch_operands = 1 : i64, tpu.core_type = #tpu.core_type<tc>} {
    %c0_i32 = arith.constant 0 : i32
    %c1_i32 = arith.constant 1 : i32
    %c0_i32_0 = arith.constant 0 : i32
    %0 = tpu.memref_slice %arg2[%c0_i32, %c1_i32, %c0_i32_0] : memref<4x16x128xf32, #tpu.memory_space<any>> -> memref<4x8x128xf32, #tpu.memory_space<any>>
    tpu.enqueue_dma source(%arg1 : memref<4x8x128xf32, #tpu.memory_space<any>>) target(%0 : memref<4x8x128xf32, #tpu.memory_space<any>>) target_semaphore(%arg3 : memref<!tpu.dma_semaphore, #tpu.memory_space<semaphore_mem>>)
    %c0_i32_1 = arith.constant 0 : i32
    %c1_i32_2 = arith.constant 1 : i32
    %c0_i32_3 = arith.constant 0 : i32
    %1 = tpu.memref_slice %arg2[%c0_i32_1, %c1_i32_2, %c0_i32_3] : memref<4x16x128xf32, #tpu.memory_space<any>> -> memref<4x8x128xf32, #tpu.memory_space<any>>
    tpu.wait_dma2 semaphore(%arg3 : memref<!tpu.dma_semaphore, #tpu.memory_space<semaphore_mem>>) src(%arg1 : memref<4x8x128xf32, #tpu.memory_space<any>>) dst(%1 : memref<4x8x128xf32, #tpu.memory_space<any>>)
    return
  }
}

</mosaic_0001>

<bundles_post_ra>
// kernel: tpu_custom_call.1
= control target key start
LH: loop header
LB: loop body
LE: loop exit
PB: predicated region body
PF: predicated region fallthrough
CT: control target
= control target key end

     0   :  { %s87_s0 = inlined_call_operand.hbm [shape: f32[4,16,128], index: 0, kind: input, shape index: {}, may-alias: {0,2}]   ;;  %s88_s1 = inlined_call_operand.vmem [shape: f32[4,8,128], index: 1, kind: input, shape index: {}]   ;;  %s89_s2 = inlined_call_operand.hbm [shape: f32[4,16,128], index: 2, kind: output, shape index: {}, may-alias: {0,2}]  }
   0x1   :  { %s7_s11 = scalar_lea.hbm %s89_s2, 16  ;;  %s9_s14 = sshll.u32 %s88_s1, 4  ;;  %s10_s14 = int_to_ptr.vmem [resolvable:$true] %s9_s14 }
   0x2   :  { %s27_s15 = scalar_lea.vmem %s10_s14, 512  ;;  %p32_p1 = scmp.lt.s32.totalorder %s10_s14, %s10_s14 }
   0x3   :  { %p28_p0 = scmp.ne.s32.totalorder %s10_s14, %s27_s15  ;;  %p33_p2 = scmp.lt.s32.totalorder %s27_s15, %s27_s15 }
   0x5   :  { %p34_p3 = por %p33_p2, %p32_p1 }
   0x7   :  { %p35_p4 = pnand %p34_p3, %p28_p0 }
   0x9   :  { %38 = shalt.err (!%p35_p4)  }
   0xa   :  { %s51_s17 = scalar_lea.hbm %s89_s2, 528  ;;  %s41_s20 = scalar_lea.hbm %s89_s2, 1024 }
   0xb   :  { %p40_p5 = scmp.ne.s32.totalorder %s7_s11, %s51_s17  ;;  %p42_p6 = scmp.lt.u32.totalorder %s7_s11, %s89_s2 }
   0xc   :  { %p43_p7 = scmp.lt.u32.totalorder %s41_s20, %s51_s17  ;;  %p45_p9 = scmp.lt.u32.totalorder %s51_s17, %s7_s11 }
   0xe   :  { %p44_p8 = por %p43_p7, %p42_p6 }
  0x10   :  { %p46_p10 = por %p45_p9, %p44_p8 }
  0x12   :  { %p47_p11 = pnand %p46_p10, %p40_p5 }
  0x14   :  { %50 = shalt.err (!%p47_p11)  }
  0x15   :  { %s54_s1 = smov 128   ;;  %s55_s23 = smov 256  }
  0x16   :  { %s56_s24 = smov 8  }
  0x17   :  { %12 = dma.vmem_to_hbm [thread:$0]  %s10_s14, 512, %s7_s11, [#allocation2], %s54_s1, %s55_s23, %s56_s24 }
  0x18   :  { %52 = dma.done.wait [#allocation2], 512 }
  0x19   :  { %53 = vsyncadd [#allocation2], 4294966784 }
  0x1a   :  { %17 = vsyncmov [#allocation2] }
  0x1d   :  { %s18_s25 = vpop.sfrf %17 }
  0x1e   :  { %p23_p12 = scmp.ne.s32.totalorder %s18_s25, 0 }
  0x20   :  { %22 = shalt.err (%p23_p12)  }

</bundles_post_ra>
